<compile_context>
chip_gen: v7x
topology: tpu7x:2x2x1
jax: 0.10.0
libtpu: 0.0.40
codegen_flags: <defaults>
</compile_context>

<pallas_src>
import jax
import jax.numpy as jnp
import numpy as np
from jax.experimental import pallas as pl
from jax.experimental.pallas import tpu as pltpu


# --------------------------- fused Pallas kernel ---------------------------

def _make_kernel(kernel_sizes, poolings, channels, batch, length, need):
    """Build the fused forward kernel (all shapes/loops static at trace time)."""
    n_layers = len(kernel_sizes)
    c_last = channels[-1]

    def kernel(x_ref, *refs):
        o_ref = refs[-1]
        wb = refs[:-1]                       # (W0, b0, W1, b1, ...)

        # Fused layout transform + receptive-field trim, all in VMEM:
        # (B, C, L) -> (B*C, need) with channels (batch-major) on sublanes and
        # time on lanes.  No wrapper-side XLA transpose/slice fusions.
        a = jnp.concatenate([x_ref[b] for b in range(batch)], axis=0)  # (B*C0, L)
        a = a[:, length - need:]                                       # (B*C0, need)
        lcur = need

        for l in range(n_layers):
            K = kernel_sizes[l]
            P = poolings[l]
            cout = channels[l + 1]
            w_ref = wb[2 * l]                # (K, 2*B*Cout, B*Cin)  block-diag over batch
            b_ref = wb[2 * l + 1]            # (2*B*Cout, 1)

            # MaxPool1d(P, ceil_mode=True) over time (= lane axis): one lane
            # reduction per output position, batched over all B*C rows.
            if P > 1:
                lp = -(-lcur // P)
                wins = [
                    jnp.max(a[:, j * P:min(j * P + P, lcur)], axis=1, keepdims=True)
                    for j in range(lp)
                ]
                a = jnp.concatenate(wins, axis=1)                      # (B*Cin, Lp)
                lcur = lp

            lout = lcur - K + 1

            # Conv1d as K accumulated MXU matmuls (no im2col lane concat); the
            # residual 1x1 conv is folded into the tap K-1 weight block
            # (stride=1 => the residual's trailing slice aligns with tap K-1).
            acc = jnp.dot(w_ref[0], a[:, 0:lout],
                          preferred_element_type=jnp.float32)
            for k in range(1, K):
                acc = acc + jnp.dot(w_ref[k], a[:, k:k + lout],
                                    preferred_element_type=jnp.float32)
            h = acc + b_ref[...]                                       # (2*B*Cout, Lout)

            cm = batch * cout
            # ReLU(main conv + b_main) + (residual conv + b_res)
            a = jnp.maximum(h[:cm, :], 0.0) + h[cm:, :]                # (B*Cout, Lout)
            lcur = lout

        # Model consumes only x[:, :, -1]: take the last time column and
        # de-stack the batch.  The (C,1)->(1,C) relayout is done with an
        # identity mask + sublane sum (bullet-proof ops) instead of a tiny
        # odd-shaped transpose.
        last = a[:, lcur - 1:lcur]                                     # (B*C_last, 1)
        ri = jax.lax.broadcasted_iota(jnp.int32, (c_last, c_last), 0)
        ci = jax.lax.broadcasted_iota(jnp.int32, (c_last, c_last), 1)
        eye = jnp.where(ri == ci, 1.0, 0.0)                            # (C_last, C_last)
        rows = []
        for b in range(batch):
            col = last[b * c_last:(b + 1) * c_last, :]                 # (C_last, 1)
            rows.append(jnp.sum(eye * col, axis=0, keepdims=True))     # (1, C_last)
        o_ref[...] = jnp.concatenate(rows, axis=0).astype(o_ref.dtype)

    return kernel


# ------------------------------ wrapper glue -------------------------------

def _receptive_field(L, kernel_sizes, poolings):
    """Trailing input steps needed to produce the final output timestep."""
    lens = [L]
    for K, P in zip(kernel_sizes, poolings):
        Lp = -(-lens[-1] // P)
        lens.append(Lp - K + 1)
    assert lens[-1] >= 1, "input too short for the final timestep"
    need = 1
    for K, P, Lin in zip(reversed(kernel_sizes), reversed(poolings),
                         lens[-2::-1]):
        Lp = -(-Lin // P)
        m = min(need + K - 1, Lp)           # pooled positions needed
        need = Lin - (Lp - m) * P
        # Trim must start exactly on a ceil-mode pooling-window boundary so the
        # trimmed windows coincide with the untrimmed reference's windows.
        assert (Lin - need) % P == 0
    return need


def prepack_params(params, args_dict, batch):
    """One-time host-side packing: block-diag-over-batch [main; residual] weights.

    Per layer: W (K, 2*B*Cout, B*Cin) with rows [0, B*Cout) = main conv
    (block-diagonal over batch) and rows [B*Cout, 2*B*Cout) = residual 1x1 conv
    (only populated in the tap K-1 slice), plus a bias column (2*B*Cout, 1).
    """
    assert all(s == 1 for s in args_dict['stride'])
    assert not args_dict['batch_norm']
    assert args_dict['residual'] and args_dict['bias']
    # TODO(synk): stride>1, batch_norm=True, residual=False and the identity
    # residual (in_channels == out_channels) paths are not implemented
    # (disabled in this config).
    packed = []
    for (wm, bm, wr, br), K in zip(params, args_dict['kernel_sizes']):
        wm = np.asarray(wm); bm = np.asarray(bm)
        wr = np.asarray(wr); br = np.asarray(br)
        cout, cin, _ = wm.shape
        dt = wm.dtype                        # keep the param dtype (no silent upcast)
        W = np.zeros((K, 2 * batch * cout, batch * cin), dt)
        bias = np.zeros((2 * batch * cout, 1), dt)
        for b in range(batch):
            ro, co = b * cout, b * cin
            for k in range(K):
                W[k, ro:ro + cout, co:co + cin] = wm[:, :, k]
            W[K - 1, batch * cout + ro: batch * cout + ro + cout,
              co:co + cin] = wr[:, :, 0]
            bias[ro:ro + cout, 0] = bm
            bias[batch * cout + ro: batch * cout + ro + cout, 0] = br
        packed.append((jnp.asarray(W), jnp.asarray(bias)))
    return packed


def build_forward(args_dict, batch, length):
    """Returns a jitted forward(x_ncw, packed) -> (B, C_last) == x[:, :, -1]."""
    ks = tuple(args_dict['kernel_sizes'])
    ps = tuple(args_dict['pooling'])
    cc = tuple(args_dict['channel_count'])
    need = _receptive_field(length, ks, ps)
    kernel = _make_kernel(ks, ps, cc, batch, length, need)

    in_specs = [pl.BlockSpec((batch, cc[0], length), lambda i: (0, 0, 0))]
    for l, K in enumerate(ks):
        cin, cout = cc[l], cc[l + 1]
        in_specs.append(pl.BlockSpec((K, 2 * batch * cout, batch * cin),
                                     lambda i: (0, 0, 0)))
        in_specs.append(pl.BlockSpec((2 * batch * cout, 1), lambda i: (0, 0)))

    call = pl.pallas_call(
        kernel,
        out_shape=jax.ShapeDtypeStruct((batch, cc[-1]), jnp.float32),
        grid=(1,),                           # whole problem on one TensorCore
        in_specs=in_specs,
        out_specs=pl.BlockSpec((batch, cc[-1]), lambda i: (0, 0)),
        compiler_params=pltpu.CompilerParams(
            dimension_semantics=("arbitrary",)),
    )

    @jax.jit
    def forward(x_ncw, packed):
        flat = [x_ncw]
        for w, b in packed:
            flat.append(w)
            flat.append(b)
        return call(*flat)

    return forward


# ------------------- parameter init (PyTorch Conv1d layout) -----------------

def init_params(args_dict, key):
    params = []
    cc = args_dict['channel_count']
    for l, K in enumerate(args_dict['kernel_sizes']):
        Cin, Cout = cc[l], cc[l + 1]
        key, k1, k2, k3, k4 = jax.random.split(key, 5)
        params.append((
            jax.random.normal(k1, (Cout, Cin, K), jnp.float32) * 0.1,   # main Conv1d
            jax.random.normal(k2, (Cout,), jnp.float32) * 0.1,
            jax.random.normal(k3, (Cout, Cin, 1), jnp.float32) * 0.1,   # residual 1x1
            jax.random.normal(k4, (Cout,), jnp.float32) * 0.1,
        ))
    return params


# -------------- pure-JAX reference (mirrors PyTorch semantics, NCW) ---------

def _ref_maxpool1d_ceil(x, p):
    if p == 1:
        return x
    B, C, L = x.shape
    Lw = -(-L // p)
    pad = Lw * p - L
    xpad = jnp.pad(x, ((0, 0), (0, 0), (0, pad)), constant_values=-jnp.inf)
    return xpad.reshape(B, C, Lw, p).max(axis=3)


def _ref_conv1d(x, w, b):
    out = jax.lax.conv_general_dilated(
        x, w, window_strides=(1,), padding='VALID',
        dimension_numbers=('NCH', 'OIH', 'NCH'))
    return out + b[None, :, None]


def reference_model(x, params, poolings):
    for (wm, bm, wr, br), p in zip(params, poolings):
        orig = x
        h = _ref_maxpool1d_ceil(x, p)
        h = jax.nn.relu(_ref_conv1d(h, wm, bm))
        r = _ref_maxpool1d_ceil(orig, p)          # pooling*stride (stride=1)
        r = _ref_conv1d(r, wr, br)
        x = h + r[:, :, -h.shape[2]:]
    return x[:, :, -1]


if __name__ == "__main__":
    args_dict = dict(
        kernel_sizes=[3, 3],
        channel_count=[4, 8, 16],
        stride=[1, 1],
        pooling=[1, 2],
        bias=True,
        batch_norm=False,
        residual=True,
        activation_register=None,   # ActivationWriter is a no-op with register=None
    )

    key = jax.random.PRNGKey(0)
    key, xkey = jax.random.split(key)
    # PyTorch Conv1d input layout NCW: (batch, channels, length)
    B, L = 2, 16
    x = jax.random.normal(xkey, (B, args_dict['channel_count'][0], L),
                          jnp.float32)
    params = init_params(args_dict, key)

    # One-time prepack (init-time); the per-call path is just the pallas_call.
    packed = prepack_params(params, args_dict, batch=B)
    forward = build_forward(args_dict, batch=B, length=L)

    out = jax.block_until_ready(forward(x, packed))

    ref = reference_model(x, params, args_dict['pooling'])
    np.testing.assert_allclose(np.asarray(out), np.asarray(ref),
                               rtol=1e-4, atol=1e-4)
    assert out.shape == (B, args_dict['channel_count'][-1])
    print("KERNEL_OK")
</pallas_src>

<mosaic_0001>
module attributes {stable_mosaic.version = 11 : i64} {
  func.func @kernel(%arg0: i32, %arg1: memref<2x4x16xf32, #tpu.memory_space<vmem>>, %arg2: memref<3x32x8xf32, #tpu.memory_space<vmem>>, %arg3: memref<32x1xf32, #tpu.memory_space<vmem>>, %arg4: memref<3x64x16xf32, #tpu.memory_space<vmem>>, %arg5: memref<64x1xf32, #tpu.memory_space<vmem>>, %arg6: memref<2x16xf32, #tpu.memory_space<vmem>>) attributes {dimension_semantics = [#tpu.dimension_semantics<arbitrary>], iteration_bounds = array<i64: 1>, scalar_prefetch = 0 : i64, scratch_operands = 0 : i64, tpu.core_type = #tpu.core_type<tc>, window_params = [{pipeline_mode = #tpu.pipeline_mode<synchronous>, transform_indices = @transform_0, window_bounds = array<i64: 2, 4, 16>}, {pipeline_mode = #tpu.pipeline_mode<synchronous>, transform_indices = @transform_1, window_bounds = array<i64: 3, 32, 8>}, {pipeline_mode = #tpu.pipeline_mode<synchronous>, transform_indices = @transform_2, window_bounds = array<i64: 32, 1>}, {pipeline_mode = #tpu.pipeline_mode<synchronous>, transform_indices = @transform_3, window_bounds = array<i64: 3, 64, 16>}, {pipeline_mode = #tpu.pipeline_mode<synchronous>, transform_indices = @transform_4, window_bounds = array<i64: 64, 1>}, {pipeline_mode = #tpu.pipeline_mode<synchronous>, transform_indices = @transform_5, window_bounds = array<i64: 2, 16>}]} {
    %c0 = arith.constant 0 : index
    %c0_0 = arith.constant 0 : index
    %c0_1 = arith.constant 0 : index
    %0 = vector.load %arg1[%c0, %c0_0, %c0_1] : memref<2x4x16xf32, #tpu.memory_space<vmem>>, vector<1x4x16xf32>
    %1 = vector.shape_cast %0 : vector<1x4x16xf32> to vector<4x16xf32>
    %c1 = arith.constant 1 : index
    %c0_2 = arith.constant 0 : index
    %c0_3 = arith.constant 0 : index
    %2 = vector.load %arg1[%c1, %c0_2, %c0_3] : memref<2x4x16xf32, #tpu.memory_space<vmem>>, vector<1x4x16xf32>
    %3 = vector.shape_cast %2 : vector<1x4x16xf32> to vector<4x16xf32>
    %4 = tpu.concatenate %1, %3 in 0 : vector<4x16xf32>, vector<4x16xf32> -> vector<8x16xf32>
    %5 = vector.extract_strided_slice %4 {offsets = [0, 8], sizes = [8, 8], strides = [1, 1]} : vector<8x16xf32> to vector<8x8xf32>
    %c0_4 = arith.constant 0 : index
    %c0_5 = arith.constant 0 : index
    %c0_6 = arith.constant 0 : index
    %6 = vector.load %arg2[%c0_4, %c0_5, %c0_6] : memref<3x32x8xf32, #tpu.memory_space<vmem>>, vector<1x32x8xf32>
    %7 = vector.shape_cast %6 : vector<1x32x8xf32> to vector<32x8xf32>
    %8 = vector.extract_strided_slice %5 {offsets = [0, 0], sizes = [8, 6], strides = [1, 1]} : vector<8x8xf32> to vector<8x6xf32>
    %cst = arith.constant dense<0.000000e+00> : vector<32x6xf32>
    %9 = tpu.matmul %7, %8, %cst {dimension_numbers = #tpu.dot_dimension_numbers<[1], [0], [0], [1], [0, 0, 1, 1], [], []>} : vector<32x8xf32>, vector<8x6xf32>, vector<32x6xf32> -> vector<32x6xf32>
    %c1_7 = arith.constant 1 : index
    %c0_8 = arith.constant 0 : index
    %c0_9 = arith.constant 0 : index
    %10 = vector.load %arg2[%c1_7, %c0_8, %c0_9] : memref<3x32x8xf32, #tpu.memory_space<vmem>>, vector<1x32x8xf32>
    %11 = vector.shape_cast %10 : vector<1x32x8xf32> to vector<32x8xf32>
    %12 = vector.extract_strided_slice %5 {offsets = [0, 1], sizes = [8, 6], strides = [1, 1]} : vector<8x8xf32> to vector<8x6xf32>
    %cst_10 = arith.constant dense<0.000000e+00> : vector<32x6xf32>
    %13 = tpu.matmul %11, %12, %cst_10 {dimension_numbers = #tpu.dot_dimension_numbers<[1], [0], [0], [1], [0, 0, 1, 1], [], []>} : vector<32x8xf32>, vector<8x6xf32>, vector<32x6xf32> -> vector<32x6xf32>
    %14 = arith.addf %9, %13 : vector<32x6xf32>
    %c2 = arith.constant 2 : index
    %c0_11 = arith.constant 0 : index
    %c0_12 = arith.constant 0 : index
    %15 = vector.load %arg2[%c2, %c0_11, %c0_12] : memref<3x32x8xf32, #tpu.memory_space<vmem>>, vector<1x32x8xf32>
    %16 = vector.shape_cast %15 : vector<1x32x8xf32> to vector<32x8xf32>
    %17 = vector.extract_strided_slice %5 {offsets = [0, 2], sizes = [8, 6], strides = [1, 1]} : vector<8x8xf32> to vector<8x6xf32>
    %cst_13 = arith.constant dense<0.000000e+00> : vector<32x6xf32>
    %18 = tpu.matmul %16, %17, %cst_13 {dimension_numbers = #tpu.dot_dimension_numbers<[1], [0], [0], [1], [0, 0, 1, 1], [], []>} : vector<32x8xf32>, vector<8x6xf32>, vector<32x6xf32> -> vector<32x6xf32>
    %19 = arith.addf %14, %18 : vector<32x6xf32>
    %c0_14 = arith.constant 0 : index
    %c0_15 = arith.constant 0 : index
    %20 = vector.load %arg3[%c0_14, %c0_15] : memref<32x1xf32, #tpu.memory_space<vmem>>, vector<32x1xf32>
    %21 = vector.broadcast %20 : vector<32x1xf32> to vector<32x6xf32>
    %22 = arith.addf %19, %21 : vector<32x6xf32>
    %23 = vector.extract_strided_slice %22 {offsets = [0, 0], sizes = [16, 6], strides = [1, 1]} : vector<32x6xf32> to vector<16x6xf32>
    %cst_16 = arith.constant 0.000000e+00 : f32
    %24 = vector.broadcast %cst_16 : f32 to vector<16x6xf32>
    %25 = arith.maximumf %23, %24 : vector<16x6xf32>
    %26 = vector.extract_strided_slice %22 {offsets = [16, 0], sizes = [16, 6], strides = [1, 1]} : vector<32x6xf32> to vector<16x6xf32>
    %27 = arith.addf %25, %26 : vector<16x6xf32>
    %28 = vector.extract_strided_slice %27 {offsets = [0, 0], sizes = [16, 2], strides = [1, 1]} : vector<16x6xf32> to vector<16x2xf32>
    %cst_17 = arith.constant dense<0xFF800000> : vector<16xf32>
    %29 = vector.multi_reduction <maximumf>, %28, %cst_17 [1] : vector<16x2xf32> to vector<16xf32>
    %30 = vector.shape_cast %29 : vector<16xf32> to vector<16x1xf32>
    %31 = vector.extract_strided_slice %27 {offsets = [0, 2], sizes = [16, 2], strides = [1, 1]} : vector<16x6xf32> to vector<16x2xf32>
    %cst_18 = arith.constant dense<0xFF800000> : vector<16xf32>
    %32 = vector.multi_reduction <maximumf>, %31, %cst_18 [1] : vector<16x2xf32> to vector<16xf32>
    %33 = vector.shape_cast %32 : vector<16xf32> to vector<16x1xf32>
    %34 = vector.extract_strided_slice %27 {offsets = [0, 4], sizes = [16, 2], strides = [1, 1]} : vector<16x6xf32> to vector<16x2xf32>
    %cst_19 = arith.constant dense<0xFF800000> : vector<16xf32>
    %35 = vector.multi_reduction <maximumf>, %34, %cst_19 [1] : vector<16x2xf32> to vector<16xf32>
    %36 = vector.shape_cast %35 : vector<16xf32> to vector<16x1xf32>
    %37 = tpu.concatenate %30, %33, %36 in 1 : vector<16x1xf32>, vector<16x1xf32>, vector<16x1xf32> -> vector<16x3xf32>
    %c0_20 = arith.constant 0 : index
    %c0_21 = arith.constant 0 : index
    %c0_22 = arith.constant 0 : index
    %38 = vector.load %arg4[%c0_20, %c0_21, %c0_22] : memref<3x64x16xf32, #tpu.memory_space<vmem>>, vector<1x64x16xf32>
    %39 = vector.shape_cast %38 : vector<1x64x16xf32> to vector<64x16xf32>
    %40 = vector.extract_strided_slice %37 {offsets = [0, 0], sizes = [16, 1], strides = [1, 1]} : vector<16x3xf32> to vector<16x1xf32>
    %cst_23 = arith.constant dense<0.000000e+00> : vector<64x1xf32>
    %41 = tpu.matmul %39, %40, %cst_23 {dimension_numbers = #tpu.dot_dimension_numbers<[1], [0], [0], [1], [0, 0, 1, 1], [], []>} : vector<64x16xf32>, vector<16x1xf32>, vector<64x1xf32> -> vector<64x1xf32>
    %c1_24 = arith.constant 1 : index
    %c0_25 = arith.constant 0 : index
    %c0_26 = arith.constant 0 : index
    %42 = vector.load %arg4[%c1_24, %c0_25, %c0_26] : memref<3x64x16xf32, #tpu.memory_space<vmem>>, vector<1x64x16xf32>
    %43 = vector.shape_cast %42 : vector<1x64x16xf32> to vector<64x16xf32>
    %44 = vector.extract_strided_slice %37 {offsets = [0, 1], sizes = [16, 1], strides = [1, 1]} : vector<16x3xf32> to vector<16x1xf32>
    %cst_27 = arith.constant dense<0.000000e+00> : vector<64x1xf32>
    %45 = tpu.matmul %43, %44, %cst_27 {dimension_numbers = #tpu.dot_dimension_numbers<[1], [0], [0], [1], [0, 0, 1, 1], [], []>} : vector<64x16xf32>, vector<16x1xf32>, vector<64x1xf32> -> vector<64x1xf32>
    %46 = arith.addf %41, %45 : vector<64x1xf32>
    %c2_28 = arith.constant 2 : index
    %c0_29 = arith.constant 0 : index
    %c0_30 = arith.constant 0 : index
    %47 = vector.load %arg4[%c2_28, %c0_29, %c0_30] : memref<3x64x16xf32, #tpu.memory_space<vmem>>, vector<1x64x16xf32>
    %48 = vector.shape_cast %47 : vector<1x64x16xf32> to vector<64x16xf32>
    %49 = vector.extract_strided_slice %37 {offsets = [0, 2], sizes = [16, 1], strides = [1, 1]} : vector<16x3xf32> to vector<16x1xf32>
    %cst_31 = arith.constant dense<0.000000e+00> : vector<64x1xf32>
    %50 = tpu.matmul %48, %49, %cst_31 {dimension_numbers = #tpu.dot_dimension_numbers<[1], [0], [0], [1], [0, 0, 1, 1], [], []>} : vector<64x16xf32>, vector<16x1xf32>, vector<64x1xf32> -> vector<64x1xf32>
    %51 = arith.addf %46, %50 : vector<64x1xf32>
    %c0_32 = arith.constant 0 : index
    %c0_33 = arith.constant 0 : index
    %52 = vector.load %arg5[%c0_32, %c0_33] : memref<64x1xf32, #tpu.memory_space<vmem>>, vector<64x1xf32>
    %53 = arith.addf %51, %52 : vector<64x1xf32>
    %54 = vector.extract_strided_slice %53 {offsets = [0, 0], sizes = [32, 1], strides = [1, 1]} : vector<64x1xf32> to vector<32x1xf32>
    %cst_34 = arith.constant 0.000000e+00 : f32
    %55 = vector.broadcast %cst_34 : f32 to vector<32x1xf32>
    %56 = arith.maximumf %54, %55 : vector<32x1xf32>
    %57 = vector.extract_strided_slice %53 {offsets = [32, 0], sizes = [32, 1], strides = [1, 1]} : vector<64x1xf32> to vector<32x1xf32>
    %58 = arith.addf %56, %57 : vector<32x1xf32>
    %59 = tpu.iota {dimensions = array<i32: 0>} : vector<16x16xi32>
    %60 = tpu.iota {dimensions = array<i32: 1>} : vector<16x16xi32>
    %61 = arith.cmpi eq, %59, %60 : vector<16x16xi32>
    %cst_35 = arith.constant 1.000000e+00 : f32
    %cst_36 = arith.constant 0.000000e+00 : f32
    %62 = vector.broadcast %cst_35 : f32 to vector<16x16xf32>
    %63 = vector.broadcast %cst_36 : f32 to vector<16x16xf32>
    %64 = arith.select %61, %62, %63 : vector<16x16xi1>, vector<16x16xf32>
    %65 = vector.extract_strided_slice %58 {offsets = [0, 0], sizes = [16, 1], strides = [1, 1]} : vector<32x1xf32> to vector<16x1xf32>
    %66 = vector.broadcast %65 : vector<16x1xf32> to vector<16x16xf32>
    %67 = arith.mulf %64, %66 : vector<16x16xf32>
    %cst_37 = arith.constant dense<0.000000e+00> : vector<16xf32>
    %68 = vector.multi_reduction <add>, %67, %cst_37 [0] : vector<16x16xf32> to vector<16xf32>
    %69 = vector.shape_cast %68 : vector<16xf32> to vector<1x16xf32>
    %70 = vector.extract_strided_slice %58 {offsets = [16, 0], sizes = [16, 1], strides = [1, 1]} : vector<32x1xf32> to vector<16x1xf32>
    %71 = vector.broadcast %70 : vector<16x1xf32> to vector<16x16xf32>
    %72 = arith.mulf %64, %71 : vector<16x16xf32>
    %cst_38 = arith.constant dense<0.000000e+00> : vector<16xf32>
    %73 = vector.multi_reduction <add>, %72, %cst_38 [0] : vector<16x16xf32> to vector<16xf32>
    %74 = vector.shape_cast %73 : vector<16xf32> to vector<1x16xf32>
    %75 = tpu.concatenate %69, %74 in 0 : vector<1x16xf32>, vector<1x16xf32> -> vector<2x16xf32>
    %c0_39 = arith.constant 0 : index
    %c0_40 = arith.constant 0 : index
    %76 = vector.load %arg6[%c0_39, %c0_40] : memref<2x16xf32, #tpu.memory_space<vmem>>, vector<2x16xf32>
    tpu.vector_store %arg6[%c0_39, %c0_40], %75 {strides = array<i32>} : memref<2x16xf32, #tpu.memory_space<vmem>>, vector<2x16xf32>,
    return
  }
  func.func @transform_0(%arg0: i32) -> (i32, i32, i32) {
    %c0_i32 = arith.constant 0 : i32
    %c0_i32_0 = arith.constant 0 : i32
    %c0_i32_1 = arith.constant 0 : i32
    %c0_i32_2 = arith.constant 0 : i32
    return %c0_i32, %c0_i32_0, %c0_i32_1 : i32, i32, i32
  }
  func.func @transform_1(%arg0: i32) -> (i32, i32, i32) {
    %c0_i32 = arith.constant 0 : i32
    %c0_i32_0 = arith.constant 0 : i32
    %c0_i32_1 = arith.constant 0 : i32
    %c0_i32_2 = arith.constant 0 : i32
    return %c0_i32, %c0_i32_0, %c0_i32_1 : i32, i32, i32
  }
  func.func @transform_2(%arg0: i32) -> (i32, i32) {
    %c0_i32 = arith.constant 0 : i32
    %c0_i32_0 = arith.constant 0 : i32
    %c0_i32_1 = arith.constant 0 : i32
    return %c0_i32, %c0_i32_0 : i32, i32
  }
  func.func @transform_3(%arg0: i32) -> (i32, i32, i32) {
    %c0_i32 = arith.constant 0 : i32
    %c0_i32_0 = arith.constant 0 : i32
    %c0_i32_1 = arith.constant 0 : i32
    %c0_i32_2 = arith.constant 0 : i32
    return %c0_i32, %c0_i32_0, %c0_i32_1 : i32, i32, i32
  }
  func.func @transform_4(%arg0: i32) -> (i32, i32) {
    %c0_i32 = arith.constant 0 : i32
    %c0_i32_0 = arith.constant 0 : i32
    %c0_i32_1 = arith.constant 0 : i32
    return %c0_i32, %c0_i32_0 : i32, i32
  }
  func.func @transform_5(%arg0: i32) -> (i32, i32) {
    %c0_i32 = arith.constant 0 : i32
    %c0_i32_0 = arith.constant 0 : i32
    %c0_i32_1 = arith.constant 0 : i32
    return %c0_i32, %c0_i32_0 : i32, i32
  }
}

</mosaic_0001>

<bundles_post_ra>
// kernel: forward.1
= control target key start
LH: loop header
LB: loop body
LE: loop exit
PB: predicated region body
PF: predicated region fallthrough
CT: control target
= control target key end

     0   :  { %vm27_vm0 = vcmask 1043456   ;;  %vm42_vm1 = vcmask 64512   ;;  %s1196_s24 = smov 119   ;;  %s1197_s25 = smov 118   ;;  %s1440_s0 = inlined_call_operand.vmem [shape: f32[2,4,16], index: 0, kind: input, shape index: {}]   ;;  %s1441_s1 = inlined_call_operand.vmem [shape: f32[3,32,8], index: 1, kind: input, shape index: {}]   ;;  %s1442_s2 = inlined_call_operand.vmem [shape: f32[32,1], index: 2, kind: input, shape index: {}]   ;;  %s1443_s3 = inlined_call_operand.vmem [shape: f32[3,64,16], index: 3, kind: input, shape index: {}]   ;;  %s1444_s4 = inlined_call_operand.vmem [shape: f32[64,1], index: 4, kind: input, shape index: {}]   ;;  %s1445_s5 = inlined_call_operand.hbm [shape: f32[2,16], index: 5, kind: output, shape index: {}]  }
   0x1   :  { %v21_v0 = vld [vmem:[%s1440_s0] sm:$0xf]  ;;  %v936_v1 = vld [vmem:[%s1440_s0 + $0x4] sm:$0xf] }
   0x2   :  { %v25_v2 = vrot.slane %v936_v1, 4  ;;  %v937_v3 = vld [vmem:[%s1441_s1 + $0x20] sm:$0xff] }
   0x3   :  { %1044 = vmatprep.mubr.msk.f32.mxu0 %vm42_vm1, %v937_v3 }
   0x4   :  { %v28_v4 = vsel %vm27_vm0, %v21_v0, %v25_v2 }
   0x5   :  { %39 = vrot.lane.b32.xlu0 %v28_v4, %s1196_s24  ;;  %245 = vrot.lane.b32.xlu1 %v28_v4, %s1197_s25 }
   0x6   :  { %10 = vsyncpa [#allocation3], 0  ;;  %s1198_s26 = smov 120   ;;  %v349_v5 = vld [vmem:[%s1442_s2] sm:$0xff]  ;;  %v1199_v6 = vmov 0   ;;  %v350_v7 = vld [vmem:[%s1442_s2 + $0x8] sm:$0xff] }
   0x7   :  { %1160 = vset.pattern.permute.xlu1 %v1199_v6  ;;  %1161 = vset.pattern.permute.xlu0 %v1199_v6  ;;  %v351_v8 = vld [vmem:[%s1442_s2 + $0x10] sm:$0xff]  ;;  %v352_v9 = vld [vmem:[%s1442_s2 + $0x18] sm:$0xff]  ;;  %v938_v11 = vld [vmem:[%s1441_s1 + $0x28] sm:$0xff]  ;;  %vm388_vm2 = vcmask 31760   ;;  %vm381_vm3 = vcmask 15360   ;;  %vm395_vm4 = vcmask 48160  }
   0x8   :  { %v939_v12 = vld [vmem:[%s1441_s1 + $0x30] sm:$0xff]  ;;  %v940_v14 = vld [vmem:[%s1441_s1 + $0x38] sm:$0xff]  ;;  %v29_v16 = vld [vmem:[%s1441_s1] sm:$0xff]  ;;  %vm402_vm5 = vcmask 7168   ;;  %vm432_vm6 = vcmask 130048   ;;  %s1200_s30 = smov 126  }
   0x9   :  { %140 = vrot.lane.b32.xlu0 %v28_v4, %s1198_s26  ;;  %355 = vperm.xlu1 %1160, %v349_v5   ;;  %v30_v17 = vld [vmem:[%s1441_s1 + $0x8] sm:$0xff]  ;;  %v31_v18 = vld [vmem:[%s1441_s1 + $0x10] sm:$0xff]  ;;  %v32_v19 = vld [vmem:[%s1441_s1 + $0x18] sm:$0xff]  ;;  %s1201_s6 = smov 127   ;;  %vm918_vm9 = vcmask 1040384   ;;  %vm920_vm10 = vcmask 123904  }
   0xa   :  { %v949_v20 = vld [vmem:[%s1441_s1 + $0x40] sm:$0xff]  ;;  %v950_v21 = vld [vmem:[%s1441_s1 + $0x48] sm:$0xff]  ;;  %v951_v22 = vld [vmem:[%s1441_s1 + $0x50] sm:$0xff] }
   0xb   :  { %v952_v23 = vld [vmem:[%s1441_s1 + $0x58] sm:$0xff]  ;;  %v963_v50 = vld [vmem:[%s1443_s3 + $0x70] sm:$0xff]  ;;  %v957_v59 = vld [vmem:[%s1443_s3 + $0x40] sm:$0xff] }
   0xc   :  { %1079 = vmatprep.mubr.msk.f32.mxu1 %vm432_vm6, %v963_v50  ;;  %v964_v3 = vld [vmem:[%s1443_s3 + $0x78] sm:$0xff]  ;;  %v958_v4 = vld [vmem:[%s1443_s3 + $0x48] sm:$0xff]  ;;  %v407_v5 = vld [vmem:[%s1443_s3] sm:$0xff] }
   0xd   :  { %360 = vperm.xlu0 %1161, %v350_v7   ;;  %365 = vperm.xlu1 %1160, %v351_v8   ;;  %v959_v6 = vld [vmem:[%s1443_s3 + $0x50] sm:$0xff]  ;;  %v408_v8 = vld [vmem:[%s1443_s3 + $0x8] sm:$0xff] }
  0x11   :  { %370 = vperm.xlu1 %1160, %v352_v9   ;;  %v960_v9 = vld [vmem:[%s1443_s3 + $0x58] sm:$0xff] }
  0x77   :  { %v40_v10 = vpop.permute.xlu0 %39  ;;  %v246_v15 = vpop.permute.xlu1 %245 }
  0x78   :  { %1042 = vmatprep.subr.mxu0 %v40_v10 }
  0x79   :  { %1043 = vmatpush3.msra.mxu0 %v40_v10  ;;  %v409_v10 = vld [vmem:[%s1443_s3 + $0x10] sm:$0xff] }
  0x7a   :  { %1045 = vmatmul.mubr.msk.f32.vlgmr.msra.gmra.mrb[0].mxu0 %vm42_vm1, %v938_v11  ;;  %v961_v11 = vld [vmem:[%s1443_s3 + $0x60] sm:$0xff] }
  0x7b   :  { %v141_v13 = vpop.permute.xlu0 %140  ;;  %1047 = vmatprep.mubr.msk.f32.mxu0 %vm42_vm1, %v939_v12  ;;  %v410_v12 = vld [vmem:[%s1443_s3 + $0x18] sm:$0xff] }
  0x7c   :  { %1050 = vmatprep.subr.mxu0 %v141_v13 }
  0x7d   :  { %1051 = vmatpush3.msra.mxu0 %v141_v13  ;;  %v962_v13 = vld [vmem:[%s1443_s3 + $0x68] sm:$0xff] }
  0x7e   :  { %1048 = vmatmul.mubr.msk.f32.gmra.mrb[2].mxu0 %vm42_vm1, %v940_v14  ;;  %1058 = vmatprep.subr.mxu0 %v246_v15  ;;  %v411_v14 = vld [vmem:[%s1443_s3 + $0x20] sm:$0xff] }
  0x7f   :  { %1052 = vmatprep.mubr.msk.f32.mxu0 %vm42_vm1, %v29_v16  ;;  %v413_v16 = vld [vmem:[%s1443_s3 + $0x30] sm:$0xff] }
  0x82   :  { %1053 = vmatmul.mubr.msk.f32.vlgmr.msra.gmra.mrb[0].mxu0 %vm42_vm1, %v30_v17  ;;  %v414_v17 = vld [vmem:[%s1443_s3 + $0x38] sm:$0xff] }
  0x83   :  { %1059 = vmatpush3.msra.mxu0 %v246_v15  ;;  %1055 = vmatprep.mubr.msk.f32.mxu0 %vm42_vm1, %v31_v18  ;;  %v412_v15 = vld [vmem:[%s1443_s3 + $0x28] sm:$0xff]  ;;  %v981_v18 = vld [vmem:[%s1443_s3 + $0x80] sm:$0xff] }
  0x86   :  { %1056 = vmatmul.mubr.msk.f32.gmra.mrb[2].mxu0 %vm42_vm1, %v32_v19  ;;  %v982_v19 = vld [vmem:[%s1443_s3 + $0x88] sm:$0xff] }
  0x87   :  { %1060 = vmatprep.mubr.msk.f32.mxu0 %vm42_vm1, %v949_v20  ;;  %v983_v20 = vld [vmem:[%s1443_s3 + $0x90] sm:$0xff] }
  0x88   :  { %v356_v24 = vpop.permute.xlu1 %355 }
  0x8a   :  { %1061 = vmatmul.mubr.msk.f32.vlgmr.msra.gmra.mrb[0].mxu0 %vm42_vm1, %v950_v21  ;;  %v984_v21 = vld [vmem:[%s1443_s3 + $0x98] sm:$0xff] }
  0x8b   :  { %1063 = vmatprep.mubr.msk.f32.mxu0 %vm42_vm1, %v951_v22  ;;  %v985_v22 = vld [vmem:[%s1443_s3 + $0xa0] sm:$0xff] }
  0x8c   :  { %v366_v25 = vpop.permute.xlu1 %365  ;;  %v361_v26 = vpop.permute.xlu0 %360 }
  0x8e   :  { %1064 = vmatmul.mubr.msk.f32.gmra.mrb[2].mxu0 %vm42_vm1, %v952_v23  ;;  %v986_v23 = vld [vmem:[%s1443_s3 + $0xa8] sm:$0xff] }
  0x8f   :  { %1070 = vmatprep.mubr.msk.f32.mxu0 %vm432_vm6, %v957_v59 }
  0x90   :  { %v371_v31 = vpop.permute.xlu1 %370 }
 0x15d   :  { %v1062_v27 = vpop.f32.mrb[0].mxu0 }
 0x15e   :  { %v374_v28 = vadd.f32 %v1062_v27, %v361_v26  ;;  %v326_v29 = vpop.f32.mrb[1].mxu0 }
 0x15f   :  { %v373_v30 = vadd.f32 %v356_v24, %v326_v29  ;;  %v987_v24 = vld [vmem:[%s1443_s3 + $0xb0] sm:$0xff] }
 0x160   :  { %v378_v33 = vmax.f32 %v374_v28, 0.0 }
 0x161   :  { %v1065_v32 = vpop.f32.mrb[2].mxu0  ;;  %v377_v36 = vmax.f32 %v373_v30, 0.0 }
 0x162   :  { %v376_v34 = vadd.f32 %v1065_v32, %v371_v31  ;;  %v336_v35 = vpop.f32.mrb[3].mxu0 }
 0x163   :  { %v375_v37 = vadd.f32 %v366_v25, %v336_v35  ;;  %v988_v25 = vld [vmem:[%s1443_s3 + $0xb8] sm:$0xff] }
 0x164   :  { %v380_v38 = vadd.f32 %v378_v33, %v376_v34 }
 0x165   :  { %v379_v39 = vadd.f32 %v377_v36, %v375_v37  ;;  %v844_v36 = vld [vmem:[%s1444_s4 + $0x8] sm:$0xff] }
 0x166   :  { %v392_v40 = vsel %vm388_vm2, %v380_v38, -inf  ;;  %v385_v41 = vsel %vm381_vm3, %v380_v38, -inf  ;;  %v399_v45 = vsel %vm395_vm4, %v380_v38, -inf  ;;  %v843_v38 = vld [vmem:[%s1444_s4] sm:$0xff] }
 0x167   :  { %393 = vmax.xlane.f32.xlu0 %v392_v40  ;;  %386 = vmax.xlane.f32.xlu1 %v385_v41  ;;  %v382_v42 = vsel %vm381_vm3, %v379_v39, -inf  ;;  %v396_v43 = vsel %vm395_vm4, %v379_v39, -inf  ;;  %v389_v44 = vsel %vm388_vm2, %v379_v39, -inf  ;;  %v846_v41 = vld [vmem:[%s1444_s4 + $0x18] sm:$0xff] }
 0x16b   :  { %383 = vmax.xlane.f32.xlu0 %v382_v42  ;;  %397 = vmax.xlane.f32.xlu1 %v396_v43 }
 0x16f   :  { %390 = vmax.xlane.f32.xlu0 %v389_v44  ;;  %v845_v44 = vld [vmem:[%s1444_s4 + $0x10] sm:$0xff] }
 0x173   :  { %400 = vmax.xlane.f32.xlu0 %v399_v45 }
 0x1f4   :  { %v394_v46 = vpop.xlane.xlu0 %393  ;;  %v387_v48 = vpop.xlane.xlu1 %386 }
 0x1f5   :  { %v404_v52 = vsel %vm402_vm5, %v387_v48, %v394_v46 }
 0x1f8   :  { %v384_v47 = vpop.xlane.xlu0 %383  ;;  %v398_v53 = vpop.xlane.xlu1 %397 }
 0x1fc   :  { %v391_v49 = vpop.xlane.xlu0 %390 }
 0x1fd   :  { %v403_v51 = vsel %vm402_vm5, %v384_v47, %v391_v49  ;;  %v848_v47 = vld [vmem:[%s1444_s4 + $0x28] sm:$0xff] }
 0x1fe   :  { %v405_v55 = vsel %vm381_vm3, %v403_v51, %v398_v53  ;;  %v847_v51 = vld [vmem:[%s1444_s4 + $0x20] sm:$0xff] }
 0x200   :  { %v401_v54 = vpop.xlane.xlu0 %400 }
 0x201   :  { %v406_v56 = vsel %vm381_vm3, %v404_v52, %v401_v54  ;;  %v850_v54 = vld [vmem:[%s1444_s4 + $0x38] sm:$0xff] }
 0x202   :  { %v1167_v57 = vpack.i.bf16 %v406_v56, %v405_v55  ;;  %v1118_v58 = vpack.c.bf16 %v406_v56, %v405_v55 }
 0x204   :  { %1168 = vrot.lane.b32.xlu0 %v1167_v57, %s1200_s30  ;;  %1163 = vrot.lane.b32.xlu1 %v1167_v57, %s1201_s6  ;;  %v849_v57 = vld [vmem:[%s1444_s4 + $0x30] sm:$0xff]  ;;  %s1203_s4 = smov [#allocation2]  }
 0x205   :  { %s928_s12 = sshll.u32 %s1203_s4, 4  ;;  %s929_s12 = int_to_ptr.vmem [resolvable:$true] %s928_s12 }
 0x206   :  { %s1172_s13 = scalar_lea.vmem %s929_s12, 32  ;;  %p1177_p1 = scmp.lt.s32.totalorder %s929_s12, %s929_s12 }
 0x207   :  { %p1173_p0 = scmp.ne.s32.totalorder %s929_s12, %s1172_s13  ;;  %p1178_p2 = scmp.lt.s32.totalorder %s1172_s13, %s1172_s13 }
 0x209   :  { %p1179_p3 = por %p1178_p2, %p1177_p1 }
 0x20b   :  { %p1180_p4 = pnand %p1179_p3, %p1173_p0 }
 0x276   :  { %v1164_v60 = vpop.permute.xlu1 %1163  ;;  %v1169_v63 = vpop.permute.xlu0 %1168 }
 0x277   :  { %v1166_v61 = vunpack.i.h.bf16 %v1164_v60  ;;  %v1165_v62 = vunpack.i.l.bf16 %v1164_v60  ;;  %v1171_v1 = vunpack.i.h.bf16 %v1169_v63  ;;  %v1170_v2 = vunpack.i.l.bf16 %v1169_v63 }
 0x279   :  { %v1114_v0 = vpack.c.bf16 %v1166_v61, %v1165_v62  ;;  %v1122_v7 = vpack.c.bf16 %v1171_v1, %v1170_v2 }
 0x27b   :  { %1115 = vmatprep.subr.bf16.mxu0 %v1114_v0  ;;  %1126 = vmatprep.subr.bf16.mxu1 %v1114_v0 }
 0x27c   :  { %1117 = vmatpush3.bf16.msra.mxu0 %v1114_v0  ;;  %1127 = vmatpush3.bf16.msra.mxu1 %v1114_v0 }
 0x27d   :  { %1119 = vmatprep.subr.bf16.mxu1 %v1118_v58 }
 0x27f   :  { %1080 = vmatmul.mubr.msk.f32.vlgmr.msra.gmra.mrb[0].mxu1 %vm432_vm6, %v964_v3  ;;  %1071 = vmatmul.mubr.msk.f32.vlgmr.msra.gmra.mrb[4].mxu0 %vm432_vm6, %v958_v4 }
 0x280   :  { %1121 = vmatpush3.bf16.msra.mxu1 %v1118_v58  ;;  %1086 = vmatprep.mubr.msk.f32.mxu1 %vm432_vm6, %v407_v5 }
 0x281   :  { %1123 = vmatprep.subr.bf16.mxu1 %v1122_v7  ;;  %1073 = vmatprep.mubr.msk.f32.mxu0 %vm432_vm6, %v959_v6  ;;  %v867_v6 = vlaneseq }
 0x283   :  { %1087 = vmatmul.mubr.msk.f32.vlgmr.msra.gmra.mrb[2].mxu1 %vm432_vm6, %v408_v8  ;;  %1074 = vmatmul.mubr.msk.f32.gmra.mrb[6].mxu0 %vm432_vm6, %v960_v9  ;;  %v871_v9 = vand.u32 127, %v867_v6 }
 0x284   :  { %1125 = vmatpush3.bf16.msra.mxu1 %v1122_v7  ;;  %1089 = vmatprep.mubr.msk.f32.mxu1 %vm432_vm6, %v409_v10  ;;  %v868_v7 = vshrl.u32 %v867_v6, 7  ;;  %v1202_v10 = vmov 0.0  }
 0x285   :  { %1076 = vmatprep.mubr.msk.f32.mxu0 %vm432_vm6, %v961_v11 }
 0x286   :  { %v869_v8 = vadd.s32 8, %v868_v7  ;;  %vm872_vm8 = vcmp.eq.s32.totalorder %v868_v7, %v871_v9 }
 0x287   :  { %1090 = vmatmul.mubr.msk.f32.gmra.mrb[4].mxu1 %vm432_vm6, %v410_v12  ;;  %1077 = vmatmul.mubr.msk.f32.gmra.mrb[8].mxu0 %vm432_vm6, %v962_v13  ;;  %v874_v13 = vsel %vm872_vm8, 1.0, %v1202_v10 }
 0x288   :  { %1092 = vmatprep.mubr.msk.f32.mxu1 %vm432_vm6, %v411_v14  ;;  %vm873_vm7 = vcmp.eq.s32.totalorder %v869_v8, %v871_v9 }
 0x289   :  { %v875_v11 = vsel %vm873_vm7, 1.0, %v1202_v10 }
 0x28b   :  { %1093 = vmatmul.mubr.msk.f32.gmra.mrb[6].mxu1 %vm432_vm6, %v412_v15 }
 0x28c   :  { %1095 = vmatprep.mubr.msk.f32.mxu1 %vm432_vm6, %v413_v16 }
 0x28f   :  { %1096 = vmatmul.mubr.msk.f32.gmra.mrb[0].mxu1 %vm432_vm6, %v414_v17 }
 0x290   :  { %1102 = vmatprep.mubr.msk.f32.mxu1 %vm432_vm6, %v981_v18 }
 0x293   :  { %1103 = vmatmul.mubr.msk.f32.vlgmr.msra.gmra.mrb[2].mxu1 %vm432_vm6, %v982_v19 }
 0x294   :  { %1105 = vmatprep.mubr.msk.f32.mxu1 %vm432_vm6, %v983_v20 }
 0x297   :  { %1106 = vmatmul.mubr.msk.f32.gmra.mrb[4].mxu1 %vm432_vm6, %v984_v21 }
 0x298   :  { %1108 = vmatprep.mubr.msk.f32.mxu1 %vm432_vm6, %v985_v22 }
 0x29b   :  { %1109 = vmatmul.mubr.msk.f32.gmra.mrb[6].mxu1 %vm432_vm6, %v986_v23 }
 0x29c   :  { %1111 = vmatprep.mubr.msk.f32.mxu1 %vm432_vm6, %v987_v24 }
 0x29f   :  { %1112 = vmatmul.mubr.msk.f32.gmra.mrb[0].mxu1 %vm432_vm6, %v988_v25 }
 0x352   :  { %v1072_v26 = vpop.f32.mrb[4].mxu0 }
 0x353   :  { %v523_v27 = vpop.f32.mrb[5].mxu0 }
 0x356   :  { %v1075_v28 = vpop.f32.mrb[6].mxu0 }
 0x357   :  { %v533_v29 = vpop.f32.mrb[7].mxu0 }
 0x35a   :  { %v1078_v30 = vpop.f32.mrb[8].mxu0 }
 0x35b   :  { %v543_v31 = vpop.f32.mrb[9].mxu0 }
 0x366   :  { %v1104_v32 = vpop.f32.mrb[2].mxu1 }
 0x367   :  { %v1128_v33 = vadd.f32 %v1104_v32, %v1072_v26  ;;  %v796_v34 = vpop.f32.mrb[3].mxu1 }
 0x368   :  { %v1129_v35 = vadd.f32 %v796_v34, %v523_v27 }
 0x369   :  { %v852_v43 = vadd.f32 %v1128_v33, %v844_v36 }
 0x36a   :  { %v1107_v37 = vpop.f32.mrb[4].mxu1  ;;  %v851_v45 = vadd.f32 %v1129_v35, %v843_v38 }
 0x36b   :  { %v1130_v39 = vadd.f32 %v1107_v37, %v1075_v28  ;;  %v806_v40 = vpop.f32.mrb[5].mxu1  ;;  %v860_v55 = vmax.f32 %v852_v43, 0.0 }
 0x36c   :  { %v1131_v42 = vadd.f32 %v806_v40, %v533_v29  ;;  %v859_v58 = vmax.f32 %v851_v45, 0.0 }
 0x36d   :  { %v854_v48 = vadd.f32 %v1130_v39, %v846_v41 }
 0x36e   :  { %v1110_v46 = vpop.f32.mrb[6].mxu1  ;;  %v853_v52 = vadd.f32 %v1131_v42, %v845_v44 }
 0x36f   :  { %v1132_v49 = vadd.f32 %v1110_v46, %v1078_v30  ;;  %v816_v50 = vpop.f32.mrb[7].mxu1  ;;  %v862_v61 = vmax.f32 %v854_v48, 0.0 }
 0x370   :  { %v1133_v53 = vadd.f32 %v816_v50, %v543_v31  ;;  %v861_v1 = vmax.f32 %v853_v52, 0.0 }
 0x371   :  { %v856_v56 = vadd.f32 %v1132_v49, %v848_v47 }
 0x372   :  { %v855_v59 = vadd.f32 %v1133_v53, %v847_v51  ;;  %v1113_v60 = vpop.f32.mrb[0].mxu1 }
 0x373   :  { %v858_v62 = vadd.f32 %v1113_v60, %v850_v54  ;;  %v826_v63 = vpop.f32.mrb[1].mxu1  ;;  %v864_v0 = vadd.f32 %v860_v55, %v856_v56 }
 0x374   :  { %v857_v2 = vadd.f32 %v849_v57, %v826_v63  ;;  %v863_v3 = vadd.f32 %v859_v58, %v855_v59 }
 0x375   :  { %v866_v4 = vadd.f32 %v862_v61, %v858_v62  ;;  %883 = vperm.xlu1 %1160, %v864_v0  }
 0x376   :  { %v865_v5 = vadd.f32 %v861_v1, %v857_v2 }
 0x378   :  { %899 = vperm.xlu0 %1161, %v865_v5  }
 0x379   :  { %878 = vperm.xlu1 %1160, %v863_v3  }
 0x37d   :  { %904 = vperm.xlu1 %1160, %v866_v4  }
 0x3f4   :  { %v884_v12 = vpop.permute.xlu1 %883 }
 0x3f5   :  { %v887_v14 = vmul.f32 %v884_v12, %v875_v11 }
 0x3f7   :  { %v900_v15 = vpop.permute.xlu0 %899  ;;  %v889_v18 = vsel %vm432_vm6, %v887_v14, 0.0 }
 0x3f8   :  { %v879_v16 = vpop.permute.xlu1 %878  ;;  %v907_v19 = vmul.f32 %v900_v15, %v874_v13 }
 0x3f9   :  { %v886_v17 = vmul.f32 %v879_v16, %v874_v13 }
 0x3fa   :  { %v909_v25 = vsel %vm432_vm6, %v907_v19, 0.0 }
 0x3fb   :  { %v888_v20 = vsel %vm432_vm6, %v886_v17, 0.0 }
 0x3fc   :  { %v890_v21 = vadd.f32 %v889_v18, %v888_v20  ;;  %v905_v22 = vpop.permute.xlu1 %904 }
 0x3fd   :  { %v908_v23 = vmul.f32 %v905_v22, %v875_v11 }
 0x3fe   :  { %v891_v24 = vrot.slane %v890_v21, 4 }
 0x3ff   :  { %v910_v26 = vsel %vm432_vm6, %v908_v23, 0.0 }
 0x400   :  { %v892_v27 = vadd.f32 %v891_v24, %v890_v21  ;;  %v911_v28 = vadd.f32 %v910_v26, %v909_v25 }
 0x402   :  { %v893_v29 = vrot.slane %v892_v27, 2  ;;  %v912_v30 = vrot.slane %v911_v28, 4 }
 0x404   :  { %v894_v31 = vadd.f32 %v893_v29, %v892_v27  ;;  %v913_v32 = vadd.f32 %v912_v30, %v911_v28 }
 0x406   :  { %v914_v33 = vrot.slane %v913_v32, 2  ;;  %v895_v35 = vrot.slane %v894_v31, 1 }
 0x408   :  { %v915_v34 = vadd.f32 %v914_v33, %v913_v32  ;;  %v896_v37 = vadd.f32 %v895_v35, %v894_v31 }
 0x40a   :  { %v916_v36 = vrot.slane %v915_v34, 1 }
 0x40c   :  { %v917_v38 = vadd.f32 %v916_v36, %v915_v34 }
 0x40e   :  { %v919_v39 = vsel %vm918_vm9, %v896_v37, %v917_v38 }
 0x40f   :  { %921 = vst.msk [vmem:[#allocation2] sm:$0x3] %vm920_vm10, %v919_v39 }
 0x410   :  { %1183 = shalt.err (!%p1180_p4)
}
 0x411   :  { %s1184_s15 = scalar_lea.hbm %s1445_s5, 32 }
 0x412   :  { %p1185_p5 = scmp.ne.s32.totalorder %s1445_s5, %s1184_s15  ;;  %p1188_p6 = scmp.lt.u32.totalorder %s1184_s15, %s1445_s5 }
 0x414   :  { %p1190_p7 = pnand %p1188_p6, %p1185_p5 }
 0x416   :  { %1193 = shalt.err (!%p1190_p7)
}
 0x417   :  { %931 = dma.vmem_to_hbm [thread:$0]  %s929_s12, 32, %s1445_s5, [#allocation3]  }
 0x418   :  { %1194 = dma.done.wait [#allocation3], 32  }
 0x419   :  { %1195 = vsyncadd [#allocation3], 4294967264 }
 0x41a   :  { %935 = vsyncpa [#allocation3], 1 }

</bundles_post_ra>
